<compile_context>
chip_gen: v7x
topology: tpu7x:2x2x1
jax: 0.10.0
libtpu: 0.0.40
codegen_flags: <defaults>
</compile_context>

<pallas_src>
import jax
import jax.numpy as jnp
from jax.experimental import pallas as pl
from jax.experimental.pallas import tpu as pltpu

N = 5        # num_nodes
DIN = 3      # in_features
H = 4        # num_heads
DOUT = 8     # linear out features (H * F; literal 2 // 4 == 0 is degenerate)
F = DOUT // H


def gat_kernel(xq_ref, xa_ref, w_ref, att_ref, out_ref):
    xq = xq_ref[...]            # (TQ, DIN)   query-row tile
    xa = xa_ref[...]            # (NA, DIN)   all nodes (neighbor side)
    w_hm = w_ref[...]           # (H, F, DIN) head-major linear weight
    att = att_ref[...]          # (H, F, F)   per-head bilinear attention

    tq = xq.shape[0]
    na = xa.shape[0]

    # Broadcast node features across the head batch axis (no extra MXU FLOPs vs one
    # fused matmul; avoids an in-kernel reshape/transpose of the projected features).
    xq_b = jnp.broadcast_to(xq, (H, tq, DIN))            # (H, TQ, DIN)
    xa_b = jnp.broadcast_to(xa, (H, na, DIN))            # (H, NA, DIN)

    # h = linear(x), head-major; weight transpose folded into the contraction.
    # hq[h,q,f] = sum_d x[q,d] * W[h*F+f, d]
    hq = jax.lax.dot_general(xq_b, w_hm, (((2,), (2,)), ((0,), (0,))),
                             preferred_element_type=jnp.float32)      # (H, TQ, F)
    ha = jax.lax.dot_general(xa_b, w_hm, (((2,), (2,)), ((0,), (0,))),
                             preferred_element_type=jnp.float32)      # (H, NA, F)

    # attn_for_self = h_prime @ attention   (batched: 'hqf,hfg->hqg')
    afs = jax.lax.dot_general(hq, att, (((2,), (1,)), ((0,), (0,))),
                              preferred_element_type=jnp.float32)     # (H, TQ, F)

    # attn_for_neighs[h,q,k] = afs[h,q,:] . h_prime[h,k,:]   ('hqg,hkg->hqk')
    s = jax.lax.dot_general(afs, ha, (((2,), (2,)), ((0,), (0,))),
                            preferred_element_type=jnp.float32)       # (H, TQ, NA)

    # LeakyReLU(negative_slope=0.2) without a compare+select pair.
    e = jnp.maximum(s, 0.2 * s)

    # softmax over the head dimension (torch dim=1 == the leading axis here).
    m = jnp.max(e, axis=0, keepdims=True)                # (1, TQ, NA)
    ex = jnp.exp(e - m)
    den = jnp.sum(ex, axis=0, keepdims=True)             # >= 1, approx recip is safe
    attn = ex * pl.reciprocal(den, approx=True)          # (H, TQ, NA)

    # TODO(synk): F.dropout(p=0.6, training=True) implemented as identity (eval
    # semantics); a training-mode mask would use pltpu.prng_seed + prng_random_bits.

    # aggregation: out[h,q,:] = sum_k attn[h,q,k] * h_prime[h,k,:]   ('hqk,hkf->hqf')
    o = jax.lax.dot_general(attn, ha, (((2,), (1,)), ((0,), (0,))),
                            preferred_element_type=jnp.float32)       # (H, TQ, F)

    # Single lane-dense store: concatenate heads along features -> (TQ, DOUT).
    out_ref[...] = jnp.concatenate([o[hd] for hd in range(H)], axis=-1)


def gat_forward(x, adj, w, att, *, row_tile=None):
    """x: (n, DIN), adj: ignored, w: (DOUT, DIN) nn.Linear weight, att: (H, F, F)."""
    del adj  # unused by the PyTorch forward as well
    n, din = x.shape
    assert w.shape == (DOUT, din) and att.shape == (H, F, F)
    if row_tile is None:
        row_tile = n                      # shipped size: one grid step
    assert n % row_tile == 0, "row_tile must divide n (edge-tile handling omitted)"
    grid = (n // row_tile,)

    w_hm = w.reshape(H, F, din)           # host-side reshape only (no transpose op)

    return pl.pallas_call(
        gat_kernel,
        out_shape=jax.ShapeDtypeStruct((n, DOUT), jnp.float32),
        grid=grid,
        in_specs=[
            pl.BlockSpec((row_tile, din), lambda i: (i, 0)),   # query-row tile
            pl.BlockSpec((n, din), lambda i: (0, 0)),          # all nodes (keys/values)
            pl.BlockSpec((H, F, din), lambda i: (0, 0, 0)),    # head-major weight
            pl.BlockSpec((H, F, F), lambda i: (0, 0, 0)),      # attention params
        ],
        out_specs=pl.BlockSpec((row_tile, DOUT), lambda i: (i, 0)),
        compiler_params=pltpu.CompilerParams(
            dimension_semantics=("parallel",)),
    )(x, x, w_hm, att)


def ref_forward(x, adj, w, att):
    """Pure-JAX reference mirroring the (shape-consistent) PyTorch forward."""
    del adj
    n = x.shape[0]
    h = x @ w.T                                       # (N, DOUT)
    hp = h.reshape(n, H, F)                           # h_prime
    afs = jnp.einsum('nhf,hfg->nhg', hp, att)         # attn_for_self
    e = jnp.einsum('nhg,mhg->nhm', afs, hp)           # attn_for_neighs
    e = jnp.where(e > 0, e, 0.2 * e)                  # LeakyReLU(0.2)
    a = jax.nn.softmax(e, axis=1)                     # softmax over heads (dim=1)
    out = jnp.einsum('nhm,mhf->nhf', a, hp)
    return out.reshape(n, H * F)


if __name__ == "__main__":
    key = jax.random.PRNGKey(0)
    k1, k2, k3, k4 = jax.random.split(key, 4)
    x = jax.random.uniform(k1, (N, DIN), dtype=jnp.float32)            # torch.rand analogue
    adj = (jax.random.uniform(k2, (N, N)) > 0.5).astype(jnp.float32)   # accepted, unused
    w = jax.random.normal(k3, (DOUT, DIN), dtype=jnp.float32) * 0.1    # nn.Linear weight
    att = jax.random.normal(k4, (H, F, F), dtype=jnp.float32) * 0.1    # attention param

    out = jax.block_until_ready(gat_forward(x, adj, w, att))
    ref = jax.block_until_ready(ref_forward(x, adj, w, att))
    assert out.shape == (N, DOUT), out.shape
    # slightly relaxed tolerance: softmax denominator uses the EUP approximate reciprocal
    assert jnp.allclose(out, ref, atol=2e-3, rtol=2e-3), jnp.max(jnp.abs(out - ref))
    print("KERNEL_OK")
</pallas_src>

<mosaic_0001>
module attributes {stable_mosaic.version = 11 : i64} {
  func.func @gat_kernel(%arg0: i32, %arg1: memref<5x3xf32, #tpu.memory_space<vmem>>, %arg2: memref<5x3xf32, #tpu.memory_space<vmem>>, %arg3: memref<4x2x3xf32, #tpu.memory_space<vmem>>, %arg4: memref<4x2x2xf32, #tpu.memory_space<vmem>>, %arg5: memref<5x8xf32, #tpu.memory_space<vmem>>) attributes {dimension_semantics = [#tpu.dimension_semantics<parallel>], iteration_bounds = array<i64: 1>, scalar_prefetch = 0 : i64, scratch_operands = 0 : i64, tpu.core_type = #tpu.core_type<tc>, window_params = [{transform_indices = @transform_0, window_bounds = array<i64: 5, 3>}, {pipeline_mode = #tpu.pipeline_mode<synchronous>, transform_indices = @transform_1, window_bounds = array<i64: 5, 3>}, {pipeline_mode = #tpu.pipeline_mode<synchronous>, transform_indices = @transform_2, window_bounds = array<i64: 4, 2, 3>}, {pipeline_mode = #tpu.pipeline_mode<synchronous>, transform_indices = @transform_3, window_bounds = array<i64: 4, 2, 2>}, {transform_indices = @transform_4, window_bounds = array<i64: 5, 8>}]} {
    %c0 = arith.constant 0 : index
    %c0_0 = arith.constant 0 : index
    %0 = vector.load %arg1[%c0, %c0_0] : memref<5x3xf32, #tpu.memory_space<vmem>>, vector<5x3xf32>
    %c0_1 = arith.constant 0 : index
    %c0_2 = arith.constant 0 : index
    %1 = vector.load %arg2[%c0_1, %c0_2] : memref<5x3xf32, #tpu.memory_space<vmem>>, vector<5x3xf32>
    %c0_3 = arith.constant 0 : index
    %c0_4 = arith.constant 0 : index
    %c0_5 = arith.constant 0 : index
    %2 = vector.load %arg3[%c0_3, %c0_4, %c0_5] : memref<4x2x3xf32, #tpu.memory_space<vmem>>, vector<4x2x3xf32>
    %c0_6 = arith.constant 0 : index
    %c0_7 = arith.constant 0 : index
    %c0_8 = arith.constant 0 : index
    %3 = vector.load %arg4[%c0_6, %c0_7, %c0_8] : memref<4x2x2xf32, #tpu.memory_space<vmem>>, vector<4x2x2xf32>
    %4 = vector.shape_cast %0 : vector<5x3xf32> to vector<1x5x3xf32>
    %5 = vector.broadcast %4 : vector<1x5x3xf32> to vector<4x5x3xf32>
    %6 = vector.shape_cast %1 : vector<5x3xf32> to vector<1x5x3xf32>
    %7 = vector.broadcast %6 : vector<1x5x3xf32> to vector<4x5x3xf32>
    %cst = arith.constant dense<0.000000e+00> : vector<4x5x2xf32>
    %8 = tpu.matmul %5, %2, %cst {dimension_numbers = #tpu.dot_dimension_numbers<[2], [2], [1], [1], [0, 0, 0, 1, 1, 1], [0], [0]>} : vector<4x5x3xf32>, vector<4x2x3xf32>, vector<4x5x2xf32> -> vector<4x5x2xf32>
    %cst_9 = arith.constant dense<0.000000e+00> : vector<4x5x2xf32>
    %9 = tpu.matmul %7, %2, %cst_9 {dimension_numbers = #tpu.dot_dimension_numbers<[2], [2], [1], [1], [0, 0, 0, 1, 1, 1], [0], [0]>} : vector<4x5x3xf32>, vector<4x2x3xf32>, vector<4x5x2xf32> -> vector<4x5x2xf32>
    %cst_10 = arith.constant dense<0.000000e+00> : vector<4x5x2xf32>
    %10 = tpu.matmul %8, %3, %cst_10 {dimension_numbers = #tpu.dot_dimension_numbers<[2], [1], [1], [2], [0, 0, 0, 1, 1, 2], [0], [0]>} : vector<4x5x2xf32>, vector<4x2x2xf32>, vector<4x5x2xf32> -> vector<4x5x2xf32>
    %cst_11 = arith.constant dense<0.000000e+00> : vector<4x5x5xf32>
    %11 = tpu.matmul %10, %9, %cst_11 {dimension_numbers = #tpu.dot_dimension_numbers<[2], [2], [1], [1], [0, 0, 0, 1, 1, 1], [0], [0]>} : vector<4x5x2xf32>, vector<4x5x2xf32>, vector<4x5x5xf32> -> vector<4x5x5xf32>
    %cst_12 = arith.constant 2.000000e-01 : f32
    %12 = vector.broadcast %cst_12 : f32 to vector<4x5x5xf32>
    %13 = arith.mulf %12, %11 : vector<4x5x5xf32>
    %14 = arith.maximumf %11, %13 : vector<4x5x5xf32>
    %cst_13 = arith.constant dense<0xFF800000> : vector<5x5xf32>
    %15 = vector.multi_reduction <maximumf>, %14, %cst_13 [0] : vector<4x5x5xf32> to vector<5x5xf32>
    %16 = vector.shape_cast %15 : vector<5x5xf32> to vector<1x5x5xf32>
    %17 = vector.broadcast %16 : vector<1x5x5xf32> to vector<4x5x5xf32>
    %18 = arith.subf %14, %17 : vector<4x5x5xf32>
    %19 = math.exp %18 : vector<4x5x5xf32>
    %cst_14 = arith.constant dense<0.000000e+00> : vector<5x5xf32>
    %20 = vector.multi_reduction <add>, %19, %cst_14 [0] : vector<4x5x5xf32> to vector<5x5xf32>
    %21 = vector.shape_cast %20 : vector<5x5xf32> to vector<1x5x5xf32>
    %22 = tpu.reciprocal %21 {approx = true} : vector<1x5x5xf32> -> vector<1x5x5xf32>
    %23 = vector.broadcast %22 : vector<1x5x5xf32> to vector<4x5x5xf32>
    %24 = arith.mulf %19, %23 : vector<4x5x5xf32>
    %cst_15 = arith.constant dense<0.000000e+00> : vector<4x5x2xf32>
    %25 = tpu.matmul %24, %9, %cst_15 {dimension_numbers = #tpu.dot_dimension_numbers<[2], [1], [1], [2], [0, 0, 0, 1, 1, 2], [0], [0]>} : vector<4x5x5xf32>, vector<4x5x2xf32>, vector<4x5x2xf32> -> vector<4x5x2xf32>
    %26 = vector.extract_strided_slice %25 {offsets = [0, 0, 0], sizes = [1, 5, 2], strides = [1, 1, 1]} : vector<4x5x2xf32> to vector<1x5x2xf32>
    %27 = vector.shape_cast %26 : vector<1x5x2xf32> to vector<5x2xf32>
    %28 = vector.extract_strided_slice %25 {offsets = [1, 0, 0], sizes = [1, 5, 2], strides = [1, 1, 1]} : vector<4x5x2xf32> to vector<1x5x2xf32>
    %29 = vector.shape_cast %28 : vector<1x5x2xf32> to vector<5x2xf32>
    %30 = vector.extract_strided_slice %25 {offsets = [2, 0, 0], sizes = [1, 5, 2], strides = [1, 1, 1]} : vector<4x5x2xf32> to vector<1x5x2xf32>
    %31 = vector.shape_cast %30 : vector<1x5x2xf32> to vector<5x2xf32>
    %32 = vector.extract_strided_slice %25 {offsets = [3, 0, 0], sizes = [1, 5, 2], strides = [1, 1, 1]} : vector<4x5x2xf32> to vector<1x5x2xf32>
    %33 = vector.shape_cast %32 : vector<1x5x2xf32> to vector<5x2xf32>
    %34 = tpu.concatenate %27, %29, %31, %33 in 1 : vector<5x2xf32>, vector<5x2xf32>, vector<5x2xf32>, vector<5x2xf32> -> vector<5x8xf32>
    %c0_16 = arith.constant 0 : index
    %c0_17 = arith.constant 0 : index
    %35 = vector.load %arg5[%c0_16, %c0_17] : memref<5x8xf32, #tpu.memory_space<vmem>>, vector<5x8xf32>
    tpu.vector_store %arg5[%c0_16, %c0_17], %34 {strides = array<i32>} : memref<5x8xf32, #tpu.memory_space<vmem>>, vector<5x8xf32>,
    return
  }
  func.func @transform_0(%arg0: i32) -> (i32, i32) {
    %c0_i32 = arith.constant 0 : i32
    %c0_i32_0 = arith.constant 0 : i32
    return %arg0, %c0_i32 : i32, i32
  }
  func.func @transform_1(%arg0: i32) -> (i32, i32) {
    %c0_i32 = arith.constant 0 : i32
    %c0_i32_0 = arith.constant 0 : i32
    %c0_i32_1 = arith.constant 0 : i32
    return %c0_i32, %c0_i32_0 : i32, i32
  }
  func.func @transform_2(%arg0: i32) -> (i32, i32, i32) {
    %c0_i32 = arith.constant 0 : i32
    %c0_i32_0 = arith.constant 0 : i32
    %c0_i32_1 = arith.constant 0 : i32
    %c0_i32_2 = arith.constant 0 : i32
    return %c0_i32, %c0_i32_0, %c0_i32_1 : i32, i32, i32
  }
  func.func @transform_3(%arg0: i32) -> (i32, i32, i32) {
    %c0_i32 = arith.constant 0 : i32
    %c0_i32_0 = arith.constant 0 : i32
    %c0_i32_1 = arith.constant 0 : i32
    %c0_i32_2 = arith.constant 0 : i32
    return %c0_i32, %c0_i32_0, %c0_i32_1 : i32, i32, i32
  }
  func.func @transform_4(%arg0: i32) -> (i32, i32) {
    %c0_i32 = arith.constant 0 : i32
    %c0_i32_0 = arith.constant 0 : i32
    return %arg0, %c0_i32 : i32, i32
  }
}

</mosaic_0001>

<bundles_post_ra>
// kernel: tpu_custom_call.1
= control target key start
LH: loop header
LB: loop body
LE: loop exit
PB: predicated region body
PF: predicated region fallthrough
CT: control target
= control target key end

     0   :  { %vm28_vm0 = vcmask 23552   ;;  %v1812_v2 = vmov 0.0   ;;  %vm1813_vm1 = vmmov 0   ;;  %s1998_s0 = inlined_call_operand.vmem [shape: f32[5,3], index: 0, kind: input, shape index: {}]   ;;  %s1999_s1 = inlined_call_operand.vmem [shape: f32[5,3], index: 1, kind: input, shape index: {}]   ;;  %s2000_s2 = inlined_call_operand.vmem [shape: f32[4,2,3], index: 2, kind: input, shape index: {}]   ;;  %s2001_s3 = inlined_call_operand.vmem [shape: f32[4,2,2], index: 3, kind: input, shape index: {}]   ;;  %s2002_s4 = inlined_call_operand.hbm [shape: f32[5,8], index: 4, kind: output, shape index: {}]  }
   0x1   :  { %v20_v0 = vld [vmem:[%s2000_s2] sm:$0x3]  ;;  %v21_v1 = vld [vmem:[%s2000_s2 + $0x2] sm:$0x3]  ;;  %1672 = vmatprep.subr.mxu0 %v1812_v2  ;;  %1677 = vmatprep.subr.mxu1 %v1812_v2  ;;  %v22_v4 = vld [vmem:[%s2000_s2 + $0x4] sm:$0x3] }
   0x2   :  { %1673 = vmatpush3.xpose.msk.msra.mxu0 %vm28_vm0, %v20_v0  ;;  %1678 = vmatpush3.xpose.msk.msra.mxu1 %vm28_vm0, %v21_v1  ;;  %v18_v3 = vld [vmem:[%s1998_s0] sm:$0x1f]  ;;  %v23_v5 = vld [vmem:[%s2000_s2 + $0x6] sm:$0x3] }
   0x3   :  { %1674 = vmatprep.mubr.msk.f32.mxu0 %vm1813_vm1, %v1812_v2  ;;  %1679 = vmatprep.mubr.msk.f32.mxu1 %vm1813_vm1, %v1812_v2 }
   0x4   :  { %9 = vsyncpa [#allocation3], 0  ;;  %1682 = vmatprep.subr.mxu0 %v1812_v2  ;;  %1687 = vmatprep.subr.mxu1 %v1812_v2  ;;  %v19_v6 = vld [vmem:[%s1999_s1] sm:$0x1f]  ;;  %vm611_vm2 = vcmask 1041408   ;;  %vm607_vm3 = vcmask 15360  }
   0x5   :  { %1675 = vmatmul.mubr.msk.f32.vlgmr.msra.gmra.mrb[0].mxu0 %vm28_vm0, %v18_v3  ;;  %1680 = vmatmul.mubr.msk.f32.vlgmr.msra.gmra.mrb[0].mxu1 %vm28_vm0, %v18_v3  ;;  %v24_v7 = vld [vmem:[%s2001_s3] sm:$0x3]  ;;  %v25_v8 = vld [vmem:[%s2001_s3 + $0x2] sm:$0x3]  ;;  %v26_v9 = vld [vmem:[%s2001_s3 + $0x4] sm:$0x3] }
   0x6   :  { %1683 = vmatpush3.xpose.msk.msra.mxu0 %vm28_vm0, %v22_v4  ;;  %1688 = vmatpush3.xpose.msk.msra.mxu1 %vm28_vm0, %v23_v5  ;;  %v27_v10 = vld [vmem:[%s2001_s3 + $0x6] sm:$0x3]  ;;  %vm1261_vm4 = vcmask 1044480   ;;  %vm1225_vm5 = vcmask 36864   ;;  %vm1257_vm6 = vcmask 39936   ;;  %s1814_s3 = smov 2  }
   0x7   :  { %1684 = vmatprep.mubr.msk.f32.mxu0 %vm1813_vm1, %v1812_v2  ;;  %1689 = vmatprep.mubr.msk.f32.mxu1 %vm1813_vm1, %v1812_v2  ;;  %s1815_s6 = smov 6   ;;  %s1816_s7 = smov 4   ;;  %vm1572_vm7 = vcmask 31744   ;;  %vm1574_vm8 = vcmask 48128   ;;  %vm1576_vm9 = vcmask 61440  }
   0x8   :  { %1692 = vmatprep.subr.mxu0 %v1812_v2  ;;  %1697 = vmatprep.subr.mxu1 %v1812_v2  ;;  %s1817_s8 = smov [#allocation2]  }
   0x9   :  { %1685 = vmatmul.mubr.msk.f32.vlgmr.msra.gmra.mrb[2].mxu0 %vm28_vm0, %v18_v3  ;;  %1690 = vmatmul.mubr.msk.f32.vlgmr.msra.gmra.mrb[2].mxu1 %vm28_vm0, %v18_v3  ;;  %s1584_s9 = sshll.u32 %s1817_s8, 4  ;;  %s1585_s9 = int_to_ptr.vmem [resolvable:$true] %s1584_s9 }
   0xa   :  { %1693 = vmatpush3.xpose.msk.msra.mxu0 %vm28_vm0, %v20_v0  ;;  %1698 = vmatpush3.xpose.msk.msra.mxu1 %vm28_vm0, %v21_v1  ;;  %s1788_s10 = scalar_lea.vmem %s1585_s9, 128  ;;  %p1793_p1 = scmp.lt.s32.totalorder %s1585_s9, %s1585_s9 }
   0xb   :  { %1694 = vmatprep.mubr.msk.f32.mxu0 %vm1813_vm1, %v1812_v2  ;;  %1699 = vmatprep.mubr.msk.f32.mxu1 %vm1813_vm1, %v1812_v2  ;;  %p1789_p0 = scmp.ne.s32.totalorder %s1585_s9, %s1788_s10  ;;  %p1794_p2 = scmp.lt.s32.totalorder %s1788_s10, %s1788_s10 }
   0xc   :  { %1702 = vmatprep.subr.mxu0 %v1812_v2  ;;  %1707 = vmatprep.subr.mxu1 %v1812_v2 }
   0xd   :  { %1695 = vmatmul.mubr.msk.f32.vlgmr.msra.gmra.mrb[4].mxu0 %vm28_vm0, %v19_v6  ;;  %1700 = vmatmul.mubr.msk.f32.vlgmr.msra.gmra.mrb[4].mxu1 %vm28_vm0, %v19_v6  ;;  %p1795_p3 = por %p1794_p2, %p1793_p1 }
   0xe   :  { %1703 = vmatpush3.xpose.msk.msra.mxu0 %vm28_vm0, %v22_v4  ;;  %1708 = vmatpush3.xpose.msk.msra.mxu1 %vm28_vm0, %v23_v5 }
   0xf   :  { %1704 = vmatprep.mubr.msk.f32.mxu0 %vm1813_vm1, %v1812_v2  ;;  %1709 = vmatprep.mubr.msk.f32.mxu1 %vm1813_vm1, %v1812_v2  ;;  %p1796_p4 = pnand %p1795_p3, %p1789_p0 }
  0x10   :  { %1712 = vmatprep.subr.mxu0 %v1812_v2  ;;  %1717 = vmatprep.subr.mxu1 %v1812_v2 }
  0x11   :  { %1705 = vmatmul.mubr.msk.f32.vlgmr.msra.gmra.mrb[6].mxu0 %vm28_vm0, %v19_v6  ;;  %1710 = vmatmul.mubr.msk.f32.vlgmr.msra.gmra.mrb[6].mxu1 %vm28_vm0, %v19_v6 }
  0x12   :  { %1713 = vmatpush3.msk.msra.mxu0 %vm611_vm2, %v24_v7  ;;  %1718 = vmatpush3.msk.msra.mxu1 %vm611_vm2, %v25_v8 }
  0x13   :  { %1714 = vmatprep.mubr.msk.f32.mxu0 %vm1813_vm1, %v1812_v2  ;;  %1719 = vmatprep.mubr.msk.f32.mxu1 %vm1813_vm1, %v1812_v2 }
  0x14   :  { %1722 = vmatprep.subr.mxu0 %v1812_v2  ;;  %1727 = vmatprep.subr.mxu1 %v1812_v2 }
  0xd8   :  { %v101_v11 = vpop.f32.mrb[0].mxu0  ;;  %v174_v12 = vpop.f32.mrb[0].mxu1 }
  0xd9   :  { %v1676_v13 = vpop.f32.mrb[1].mxu0  ;;  %v1681_v14 = vpop.f32.mrb[1].mxu1  ;;  %1715 = vmatmul.mubr.msk.f32.vlgmr.msra.gmra.mrb[8].mxu0 %vm607_vm3, %v101_v11  ;;  %1720 = vmatmul.mubr.msk.f32.vlgmr.msra.gmra.mrb[8].mxu1 %vm607_vm3, %v174_v12 }
  0xda   :  { %1723 = vmatpush3.msk.msra.mxu0 %vm611_vm2, %v26_v9  ;;  %1728 = vmatpush3.msk.msra.mxu1 %vm611_vm2, %v27_v10 }
  0xdb   :  { %1724 = vmatprep.mubr.msk.f32.mxu0 %vm1813_vm1, %v1812_v2  ;;  %1729 = vmatprep.mubr.msk.f32.mxu1 %vm1813_vm1, %v1812_v2 }
  0xdc   :  { %v247_v15 = vpop.f32.mrb[2].mxu0  ;;  %v320_v16 = vpop.f32.mrb[2].mxu1  ;;  %1732 = vmatprep.subr.mxu0 %v1812_v2  ;;  %1737 = vmatprep.subr.mxu1 %v1812_v2 }
  0xdd   :  { %v1686_v17 = vpop.f32.mrb[3].mxu0  ;;  %v1691_v18 = vpop.f32.mrb[3].mxu1  ;;  %1725 = vmatmul.mubr.msk.f32.vlgmr.msra.gmra.mrb[10].mxu0 %vm607_vm3, %v247_v15  ;;  %1730 = vmatmul.mubr.msk.f32.vlgmr.msra.gmra.mrb[10].mxu1 %vm607_vm3, %v320_v16 }
  0xde   :  { %1734 = vmatprep.mubr.msk.f32.mxu0 %vm1813_vm1, %v1812_v2  ;;  %1739 = vmatprep.mubr.msk.f32.mxu1 %vm1813_vm1, %v1812_v2 }
  0xe0   :  { %v393_v19 = vpop.f32.mrb[4].mxu0  ;;  %v463_v20 = vpop.f32.mrb[4].mxu1 }
  0xe1   :  { %v1696_v21 = vpop.f32.mrb[5].mxu0  ;;  %v1701_v22 = vpop.f32.mrb[5].mxu1  ;;  %1733 = vmatpush3.xpose.msk.msra.mxu0 %vm607_vm3, %v393_v19  ;;  %1738 = vmatpush3.xpose.msk.msra.mxu1 %vm607_vm3, %v463_v20 }
  0xe2   :  { %1742 = vmatprep.subr.mxu0 %v1812_v2  ;;  %1747 = vmatprep.subr.mxu1 %v1812_v2 }
  0xe4   :  { %v1943_v23 = vpop.f32.mrb[6].mxu0  ;;  %v1945_v24 = vpop.f32.mrb[6].mxu1 }
  0xe5   :  { %v1706_v25 = vpop.f32.mrb[7].mxu0  ;;  %v1711_v26 = vpop.f32.mrb[7].mxu1 }
 0x1ac   :  { %v681_v27 = vpop.f32.mrb[8].mxu0  ;;  %v757_v28 = vpop.f32.mrb[8].mxu1 }
 0x1ad   :  { %v1716_v29 = vpop.f32.mrb[9].mxu0  ;;  %v1721_v30 = vpop.f32.mrb[9].mxu1  ;;  %1735 = vmatmul.mubr.msk.f32.vlgmr.msra.gmra.mrb[12].mxu0 %vm607_vm3, %v681_v27  ;;  %1740 = vmatmul.mubr.msk.f32.vlgmr.msra.gmra.mrb[12].mxu1 %vm607_vm3, %v757_v28 }
 0x1ae   :  { %1743 = vmatpush3.xpose.msk.msra.mxu0 %vm607_vm3, %v1943_v23  ;;  %1748 = vmatpush3.xpose.msk.msra.mxu1 %vm607_vm3, %v1945_v24 }
 0x1af   :  { %1744 = vmatprep.mubr.msk.f32.mxu0 %vm1813_vm1, %v1812_v2  ;;  %1749 = vmatprep.mubr.msk.f32.mxu1 %vm1813_vm1, %v1812_v2 }
 0x1b0   :  { %v833_v31 = vpop.f32.mrb[10].mxu0  ;;  %v909_v32 = vpop.f32.mrb[10].mxu1  ;;  %1752 = vmatprep.subr.mxu0 %v1812_v2  ;;  %1757 = vmatprep.subr.mxu1 %v1812_v2 }
 0x1b1   :  { %v1726_v33 = vpop.f32.mrb[11].mxu0  ;;  %v1731_v34 = vpop.f32.mrb[11].mxu1  ;;  %1745 = vmatmul.mubr.msk.f32.vlgmr.msra.gmra.mrb[14].mxu0 %vm607_vm3, %v833_v31  ;;  %1750 = vmatmul.mubr.msk.f32.vlgmr.msra.gmra.mrb[14].mxu1 %vm607_vm3, %v909_v32 }
 0x1b2   :  { %1753 = vmatpush3.msk.msra.mxu0 %vm1261_vm4, %v393_v19  ;;  %1758 = vmatpush3.msk.msra.mxu1 %vm1261_vm4, %v463_v20 }
 0x1b3   :  { %1754 = vmatprep.mubr.msk.f32.mxu0 %vm1813_vm1, %v1812_v2  ;;  %1759 = vmatprep.mubr.msk.f32.mxu1 %vm1813_vm1, %v1812_v2 }
 0x1b4   :  { %1762 = vmatprep.subr.mxu0 %v1812_v2  ;;  %1767 = vmatprep.subr.mxu1 %v1812_v2 }
 0x280   :  { %v985_v35 = vpop.f32.mrb[12].mxu0  ;;  %v1061_v36 = vpop.f32.mrb[12].mxu1 }
 0x281   :  { %v1217_v37 = vmul.f32 0.2, %v985_v35  ;;  %v1218_v38 = vmul.f32 0.2, %v1061_v36  ;;  %v1736_v39 = vpop.f32.mrb[13].mxu0  ;;  %v1741_v40 = vpop.f32.mrb[13].mxu1 }
 0x283   :  { %v1221_v41 = vmax.f32 %v985_v35, %v1217_v37  ;;  %v1222_v42 = vmax.f32 %v1061_v36, %v1218_v38 }
 0x284   :  { %v1137_v43 = vpop.f32.mrb[14].mxu0  ;;  %v1213_v44 = vpop.f32.mrb[14].mxu1 }
 0x285   :  { %v1226_v45 = vsel %vm1225_vm5, %v1221_v41, -inf  ;;  %v1227_v46 = vsel %vm1225_vm5, %v1222_v42, -inf  ;;  %v1219_v47 = vmul.f32 0.2, %v1137_v43  ;;  %v1220_v48 = vmul.f32 0.2, %v1213_v44 }
 0x286   :  { %v1230_v49 = vmax.f32 %v1226_v45, %v1227_v46  ;;  %v1746_v50 = vpop.f32.mrb[15].mxu0  ;;  %v1751_v51 = vpop.f32.mrb[15].mxu1 }
 0x287   :  { %v1223_v52 = vmax.f32 %v1137_v43, %v1219_v47  ;;  %v1224_v53 = vmax.f32 %v1213_v44, %v1220_v48 }
 0x289   :  { %v1228_v54 = vsel %vm1225_vm5, %v1223_v52, -inf  ;;  %v1229_v55 = vsel %vm1225_vm5, %v1224_v53, -inf }
 0x28a   :  { %v1231_v56 = vmax.f32 %v1228_v54, %v1229_v55 }
 0x28c   :  { %v1232_v57 = vmax.f32 %v1230_v49, %v1231_v56 }
 0x28e   :  { %v1233_v58 = vsub.f32 %v1221_v41, %v1232_v57  ;;  %v1234_v59 = vsub.f32 %v1222_v42, %v1232_v57  ;;  %v1235_v60 = vsub.f32 %v1223_v52, %v1232_v57  ;;  %v1236_v61 = vsub.f32 %v1224_v53, %v1232_v57 }
 0x290   :  { %v1237_v62 = vmul.f32 1.442695, %v1233_v58  ;;  %v1239_v63 = vmul.f32 1.442695, %v1234_v59  ;;  %v1241_v0 = vmul.f32 1.442695, %v1235_v60 }
 0x291   :  { %v1243_v1 = vmul.f32 1.442695, %v1236_v61 }
 0x292   :  { %1778 = vpow2.f32 %v1237_v62 }
 0x293   :  { %1780 = vpow2.f32 %v1239_v63 }
 0x294   :  { %1782 = vpow2.f32 %v1241_v0 }
 0x295   :  { %1784 = vpow2.f32 %v1243_v1 }
 0x29c   :  { %v1779_v3 = vpop.eup %1778 }
 0x29d   :  { %v1781_v4 = vpop.eup %1780  ;;  %v1245_v5 = vsel %vm1225_vm5, %v1779_v3, 0.0 }
 0x29e   :  { %v1783_v6 = vpop.eup %1782  ;;  %v1246_v7 = vsel %vm1225_vm5, %v1781_v4, 0.0 }
 0x29f   :  { %v1785_v8 = vpop.eup %1784  ;;  %v1247_v9 = vadd.f32 %v1246_v7, %v1245_v5  ;;  %v1248_v10 = vsel %vm1225_vm5, %v1783_v6, 0.0 }
 0x2a0   :  { %v1250_v12 = vsel %vm1225_vm5, %v1785_v8, 0.0 }
 0x2a1   :  { %v1249_v11 = vadd.f32 %v1248_v10, %v1247_v9 }
 0x2a3   :  { %v1251_v13 = vadd.f32 %v1250_v12, %v1249_v11 }
 0x2a5   :  { %1786 = vrcp.f32 %v1251_v13 }
 0x2af   :  { %v1787_v14 = vpop.eup %1786 }
 0x2b0   :  { %v1253_v15 = vmul.f32 %v1787_v14, %v1779_v3  ;;  %v1254_v16 = vmul.f32 %v1787_v14, %v1781_v4  ;;  %v1255_v17 = vmul.f32 %v1787_v14, %v1783_v6  ;;  %v1256_v18 = vmul.f32 %v1787_v14, %v1785_v8 }
 0x2b2   :  { %1755 = vmatmul.mubr.msk.f32.vlgmr.msra.gmra.mrb[16].mxu0 %vm1257_vm6, %v1253_v15  ;;  %1760 = vmatmul.mubr.msk.f32.vlgmr.msra.gmra.mrb[16].mxu1 %vm1257_vm6, %v1254_v16 }
 0x2b3   :  { %1763 = vmatpush3.msk.msra.mxu0 %vm1261_vm4, %v1943_v23  ;;  %1768 = vmatpush3.msk.msra.mxu1 %vm1261_vm4, %v1945_v24 }
 0x2b4   :  { %1764 = vmatprep.mubr.msk.f32.mxu0 %vm1813_vm1, %v1812_v2  ;;  %1769 = vmatprep.mubr.msk.f32.mxu1 %vm1813_vm1, %v1812_v2 }
 0x2b6   :  { %1765 = vmatmul.mubr.msk.f32.vlgmr.msra.gmra.mrb[18].mxu0 %vm1257_vm6, %v1255_v17  ;;  %1770 = vmatmul.mubr.msk.f32.vlgmr.msra.gmra.mrb[18].mxu1 %vm1257_vm6, %v1256_v18 }
 0x385   :  { %v1330_v19 = vpop.f32.mrb[16].mxu0  ;;  %v1405_v20 = vpop.f32.mrb[16].mxu1 }
 0x386   :  { %1560 = vrot.lane.b32.xlu0 %v1405_v20, %s1814_s3  ;;  %v1756_v21 = vpop.f32.mrb[17].mxu0  ;;  %v1761_v22 = vpop.f32.mrb[17].mxu1 }
 0x389   :  { %v1480_v25 = vpop.f32.mrb[18].mxu0  ;;  %v1555_v26 = vpop.f32.mrb[18].mxu1 }
 0x38a   :  { %1568 = vrot.lane.b32.xlu1 %v1555_v26, %s1815_s6  ;;  %v1771_v23 = vpop.f32.mrb[19].mxu1  ;;  %1564 = vrot.lane.b32.xlu0 %v1480_v25, %s1816_s7  ;;  %v1766_v24 = vpop.f32.mrb[19].mxu0 }
 0x3f8   :  { %v1561_v27 = vpop.permute.xlu0 %1560 }
 0x3f9   :  { %v1571_v2 = vsel %vm607_vm3, %v1330_v19, %v1561_v27 }
 0x3fc   :  { %v1569_v28 = vpop.permute.xlu1 %1568  ;;  %v1565_v29 = vpop.permute.xlu0 %1564 }
 0x3fd   :  { %v1573_v30 = vsel %vm1572_vm7, %v1571_v2, %v1565_v29 }
 0x3fe   :  { %v1575_v31 = vsel %vm1574_vm8, %v1573_v30, %v1569_v28 }
 0x3ff   :  { %1577 = vst.msk [vmem:[#allocation2] sm:$0x1f] %vm1576_vm9, %v1575_v31 }
 0x400   :  { %1799 = shalt.err (!%p1796_p4)
}
 0x401   :  { %s1800_s13 = scalar_lea.hbm %s2002_s4, 128 }
 0x402   :  { %p1801_p5 = scmp.ne.s32.totalorder %s2002_s4, %s1800_s13  ;;  %p1804_p6 = scmp.lt.u32.totalorder %s1800_s13, %s2002_s4 }
 0x404   :  { %p1806_p7 = pnand %p1804_p6, %p1801_p5 }
 0x406   :  { %1809 = shalt.err (!%p1806_p7)
}
 0x407   :  { %1587 = dma.vmem_to_hbm [thread:$0]  %s1585_s9, 128, %s2002_s4, [#allocation3]  }
 0x408   :  { %1810 = dma.done.wait [#allocation3], 128  }
 0x409   :  { %1811 = vsyncadd [#allocation3], 4294967168 }
 0x40a   :  { %1591 = vsyncpa [#allocation3], 1 }

</bundles_post_ra>
